<compile_context>
chip_gen: v7x
topology: tpu7x:2x2x1
jax: 0.10.0
libtpu: 0.0.40
codegen_flags: <defaults>
</compile_context>

<pallas_src>
import jax
import jax.numpy as jnp
from jax.experimental import pallas as pl
from jax.experimental.pallas import tpu as pltpu

_LANE_CANDIDATES = (1024, 512, 256, 128)  # lane-dense last dims (mult. of 128)
_DEFAULT_TILE_BUDGET = 8 << 20            # (input + output) bytes per pipeline stage
_MAX_TILE_ROWS = 2048
_SMALL_INPUT_BYTES = 1 << 20              # below this, a fused XLA multiply wins


def _sublane_pack(dtype):
    """Sublane packing factor: 8 for 4-byte, 16 for 2-byte, 32 for 1-byte dtypes."""
    return max(8, 32 // jnp.dtype(dtype).itemsize)


def _scale_factor(scale_param, tau, mode):
    """sqrt of the Scaler gate, computed once in f32 (scalar hoist)."""
    if mode not in ("positive", "negative"):
        raise ValueError(f"mode must be 'positive' or 'negative', got {mode!r}")
    s = scale_param.astype(jnp.float32).reshape(())
    if mode == "positive":
        sc = tau + (1.0 - tau) * jax.nn.sigmoid(s)
    else:
        sc = (1.0 - tau) * jax.nn.sigmoid(-s)
    return jnp.sqrt(sc)


def _scaler_kernel(factor_ref, x_ref, o_ref):
    # factor_ref: SMEM (1,) f32 — sqrt(scale), precomputed in the wrapper.
    # x_ref / o_ref: (tile_r, lane) VMEM tiles.
    f = factor_ref[0]
    o_ref[...] = (x_ref[...].astype(jnp.float32) * f).astype(o_ref.dtype)


def scaler_forward(inputs, scale_param, tau=0.5, mode="positive", *,
                   min_pallas_bytes=_SMALL_INPUT_BYTES,
                   tile_budget_bytes=_DEFAULT_TILE_BUDGET):
    """Equivalent of Scaler.forward.

    inputs:      any-shape array (NCHW in the test below)
    scale_param: shape (1,) f32 parameter (torch.zeros(1) at init)
    """
    tau = float(tau)
    factor_scalar = _scale_factor(scale_param, tau, mode)
    # PyTorch type promotion: tensor * f32 parameter -> at least f32.
    out_dtype = jnp.promote_types(inputs.dtype, jnp.float32)

    total = int(inputs.size)
    in_itemsize = jnp.dtype(inputs.dtype).itemsize
    in_bytes = total * in_itemsize

    # Pick the widest lane count (multiple of 128) that divides the input.
    lane = next((l for l in _LANE_CANDIDATES if total % l == 0), None)

    # Fast path: tiny tensors or ragged sizes.  A fused XLA multiply is already
    # at the HBM roofline and avoids pallas_call dispatch + pad/concat passes.
    if total == 0 or in_bytes < min_pallas_bytes or lane is None:
        return (inputs.astype(jnp.float32) * factor_scalar).astype(out_dtype)

    rows = total // lane
    out_itemsize = jnp.dtype(out_dtype).itemsize
    pack = max(_sublane_pack(inputs.dtype), _sublane_pack(out_dtype))

    # Tile rows: keep (input + output) per stage near the byte budget, rounded
    # down to the sublane packing factor, capped at _MAX_TILE_ROWS.
    per_row_bytes = lane * (in_itemsize + out_itemsize)
    max_rows = max(pack, (tile_budget_bytes // per_row_bytes) // pack * pack)
    max_rows = min(max_rows, _MAX_TILE_ROWS)

    if rows <= max_rows:
        tile_r = rows          # single block, full-extent dims -> always legal
    else:
        tile_r = max_rows      # multiple of the packing factor; last block may
                               # be partial (Pallas masks the boundary writes)
    num_tiles = pl.cdiv(rows, tile_r)

    factor = factor_scalar.reshape(1).astype(jnp.float32)
    x2d = inputs.reshape(rows, lane)   # pure reshape, no pad / extra HBM pass

    out2d = pl.pallas_call(
        _scaler_kernel,
        out_shape=jax.ShapeDtypeStruct((rows, lane), out_dtype),
        grid_spec=pl.GridSpec(
            grid=(num_tiles,),
            in_specs=[
                pl.BlockSpec(memory_space=pltpu.SMEM),             # factor
                pl.BlockSpec((tile_r, lane), lambda i: (i, 0)),    # input tile
            ],
            out_specs=pl.BlockSpec((tile_r, lane), lambda i: (i, 0)),
        ),
        compiler_params=pltpu.CompilerParams(
            dimension_semantics=("parallel",),
            # State the VMEM budget explicitly: double-buffered in+out at the
            # chosen tile is ~16 MiB (f32); 48 MiB is above every generation's
            # scoped default and below v7x's 64 MiB physical ceiling.
            vmem_limit_bytes=48 << 20,
        ),
    )(factor, x2d)

    return out2d.reshape(inputs.shape)


if __name__ == "__main__":
    key = jax.random.PRNGKey(0)
    x = jax.random.normal(key, (2, 4, 16, 16), dtype=jnp.float32)  # NCHW

    # Deterministic parameter init, matching nn.Parameter(torch.zeros(1)).
    scale_param = jnp.zeros((1,), dtype=jnp.float32)
    tau = 0.5

    # The test input is tiny, so force the Pallas path (by default it would
    # take the fused-XLA fast path).
    out_pos = scaler_forward(x, scale_param, tau=tau, mode="positive",
                             min_pallas_bytes=0)
    out_neg = scaler_forward(x, scale_param, tau=tau, mode="negative",
                             min_pallas_bytes=0)

    # Exercise the multi-tile grid path with a deliberately small tile budget
    # (rows=32, tile_r=8 -> 4 grid steps) while keeping shapes small.
    x2 = jax.random.normal(jax.random.PRNGKey(1), (4, 8, 32, 32),
                           dtype=jnp.float32)
    out_tiled = scaler_forward(x2, scale_param, tau=tau, mode="positive",
                               min_pallas_bytes=0, tile_budget_bytes=64 << 10)

    jax.block_until_ready((out_pos, out_neg, out_tiled))

    # Reference check in plain JAX (mirrors the PyTorch math).
    ref_pos = x * jnp.sqrt(tau + (1 - tau) * jax.nn.sigmoid(scale_param[0]))
    ref_neg = x * jnp.sqrt((1 - tau) * jax.nn.sigmoid(-scale_param[0]))
    ref_tiled = x2 * jnp.sqrt(tau + (1 - tau) * jax.nn.sigmoid(scale_param[0]))

    assert out_pos.shape == x.shape and out_pos.dtype == x.dtype
    assert out_neg.shape == x.shape
    assert jnp.allclose(out_pos, ref_pos, atol=1e-6)
    assert jnp.allclose(out_neg, ref_neg, atol=1e-6)
    assert jnp.allclose(out_tiled, ref_tiled, atol=1e-6)

    print("KERNEL_OK")
</pallas_src>

<mosaic_0001>
module attributes {stable_mosaic.version = 11 : i64} {
  func.func @_scaler_kernel(%arg0: i32, %arg1: memref<1xf32, #tpu.memory_space<smem>>, %arg2: memref<2x1024xf32, #tpu.memory_space<vmem>>, %arg3: memref<2x1024xf32, #tpu.memory_space<vmem>>) attributes {dimension_semantics = [#tpu.dimension_semantics<parallel>], iteration_bounds = array<i64: 1>, scalar_prefetch = 0 : i64, scratch_operands = 0 : i64, tpu.core_type = #tpu.core_type<tc>, window_params = [{transform_indices = @transform_0, window_bounds = array<i64: 1>}, {transform_indices = @transform_1, window_bounds = array<i64: 2, 1024>}, {transform_indices = @transform_2, window_bounds = array<i64: 2, 1024>}]} {
    %c0 = arith.constant 0 : index
    %0 = memref.load %arg1[%c0] : memref<1xf32, #tpu.memory_space<smem>>
    %c0_0 = arith.constant 0 : index
    %c0_1 = arith.constant 0 : index
    %1 = vector.load %arg2[%c0_0, %c0_1] : memref<2x1024xf32, #tpu.memory_space<vmem>>, vector<2x1024xf32>
    %2 = vector.broadcast %0 : f32 to vector<2x1024xf32>
    %3 = arith.mulf %1, %2 : vector<2x1024xf32>
    %c0_2 = arith.constant 0 : index
    %c0_3 = arith.constant 0 : index
    %4 = vector.load %arg3[%c0_2, %c0_3] : memref<2x1024xf32, #tpu.memory_space<vmem>>, vector<2x1024xf32>
    tpu.vector_store %arg3[%c0_2, %c0_3], %3 {strides = array<i32>} : memref<2x1024xf32, #tpu.memory_space<vmem>>, vector<2x1024xf32>,
    return
  }
  func.func @transform_0(%arg0: i32) -> i32 {
    %c0_i32 = arith.constant 0 : i32
    %c0_i32_0 = arith.constant 0 : i32
    return %c0_i32 : i32
  }
  func.func @transform_1(%arg0: i32) -> (i32, i32) {
    %c0_i32 = arith.constant 0 : i32
    %c0_i32_0 = arith.constant 0 : i32
    return %arg0, %c0_i32 : i32, i32
  }
  func.func @transform_2(%arg0: i32) -> (i32, i32) {
    %c0_i32 = arith.constant 0 : i32
    %c0_i32_0 = arith.constant 0 : i32
    return %arg0, %c0_i32 : i32, i32
  }
}

</mosaic_0001>

<bundles_post_ra>
// kernel: tpu_custom_call.1
= control target key start
LH: loop header
LB: loop body
LE: loop exit
PB: predicated region body
PF: predicated region fallthrough
CT: control target
= control target key end

     0   :  { %8 = vsyncpa [#allocation4], 0  ;;  %s142_s0 = inlined_call_operand.<no memory space> [shape: f32[1], index: 0, kind: input, shape index: {}]   ;;  %s143_s1 = inlined_call_operand.hbm [shape: f32[2,1024], index: 1, kind: input, shape index: {}]   ;;  %s144_s2 = inlined_call_operand.hbm [shape: f32[2,1024], index: 2, kind: output, shape index: {}]  }
   0x1   :  { %9 = vsyncpa [#allocation5], 0  ;;  %s98_s9 = smov [#allocation3]   ;;  %s50_s13 = scalar_lea.hbm %s143_s1, 256 }
   0x2   :  { %s18_s10 = sshll.u32 %s98_s9, 4  ;;  %p51_p0 = scmp.ne.s32.totalorder %s143_s1, %s50_s13  ;;  %s19_s10 = int_to_ptr.vmem [resolvable:$true] %s18_s10 }
   0x3   :  { %p54_p1 = scmp.lt.u32.totalorder %s50_s13, %s143_s1 }
   0x5   :  { %p56_p2 = pnand %p54_p1, %p51_p0 }
   0x7   :  { %59 = shalt.err (!%p56_p2)
}
   0x8   :  { %s60_s18 = scalar_lea.vmem %s19_s10, 256  ;;  %p65_p4 = scmp.lt.s32.totalorder %s19_s10, %s19_s10 }
   0x9   :  { %p61_p3 = scmp.ne.s32.totalorder %s19_s10, %s60_s18  ;;  %p66_p5 = scmp.lt.s32.totalorder %s60_s18, %s60_s18 }
   0xb   :  { %p67_p6 = por %p66_p5, %p65_p4 }
   0xd   :  { %p68_p7 = pnand %p67_p6, %p61_p3 }
   0xf   :  { %71 = shalt.err (!%p68_p7)
}
  0x10   :  { %21 = dma.hbm_to_vmem [thread:$0]  %s143_s1, 256, %s19_s10, [#allocation4]  }
  0x11   :  { %94 = dma.done.wait [#allocation4], 256  }
  0x12   :  { %95 = vsyncadd [#allocation4], 4294967040  ;;  %v28_v0 = vstv %s142_s0  ;;  %s99_s23 = smov [#allocation6]   ;;  %v26_v1 = vld [vmem:[#allocation3] sm:$0xff]  ;;  %v27_v2 = vld [vmem:[#allocation3 + $0x8] sm:$0xff] }
  0x13   :  { %s39_s24 = sshll.u32 %s99_s23, 4  ;;  %v29_v3 = vmul.f32 %v28_v0, %v26_v1  ;;  %v30_v4 = vmul.f32 %v28_v0, %v27_v2  ;;  %s40_s24 = int_to_ptr.vmem [resolvable:$true] %s39_s24 }
  0x14   :  { %s72_s25 = scalar_lea.vmem %s40_s24, 256  ;;  %p77_p9 = scmp.lt.s32.totalorder %s40_s24, %s40_s24 }
  0x15   :  { %31 = vst [vmem:[#allocation6] sm:$0xff] %v29_v3  ;;  %32 = vst [vmem:[#allocation6 + $0x8] sm:$0xff] %v30_v4  ;;  %p73_p8 = scmp.ne.s32.totalorder %s40_s24, %s72_s25  ;;  %p78_p10 = scmp.lt.s32.totalorder %s72_s25, %s72_s25 }
  0x17   :  { %p79_p11 = por %p78_p10, %p77_p9 }
  0x19   :  { %p80_p12 = pnand %p79_p11, %p73_p8 }
  0x1b   :  { %83 = shalt.err (!%p80_p12)
}
  0x1c   :  { %s84_s0 = scalar_lea.hbm %s144_s2, 256 }
  0x1d   :  { %p85_p13 = scmp.ne.s32.totalorder %s144_s2, %s84_s0  ;;  %p88_p0 = scmp.lt.u32.totalorder %s84_s0, %s144_s2 }
  0x1f   :  { %p90_p1 = pnand %p88_p0, %p85_p13 }
  0x21   :  { %93 = shalt.err (!%p90_p1)
}
  0x22   :  { %42 = dma.vmem_to_hbm [thread:$0]  %s40_s24, 256, %s144_s2, [#allocation5]  }
  0x23   :  { %96 = dma.done.wait [#allocation5], 256  }
  0x24   :  { %97 = vsyncadd [#allocation5], 4294967040 }
  0x25   :  { %46 = vsyncpa [#allocation4], 1 }
  0x26   :  { %47 = vsyncpa [#allocation5], 1 }

</bundles_post_ra>
